<compile_context>
chip_gen: v7x
topology: tpu7x:2x2x1
jax: 0.10.0
libtpu: 0.0.40
codegen_flags: <defaults>
</compile_context>

<pallas_src>
import math
import functools

import jax
import jax.numpy as jnp
from jax.experimental import pallas as pl
from jax.experimental.pallas import tpu as pltpu


_TINY_PROBLEM_BYTES = 4 * 1024 * 1024  # below this, never split the grid


def _eca_kernel_size(channel: int, b: int = 1, gamma: int = 2) -> int:
    kernel_size = int(abs((math.log(channel, 2) + b) / gamma))
    return kernel_size if kernel_size % 2 else kernel_size + 1


def _vmem_limits():
    """Generation-aware budgets: scoped VMEM limit ~70% of physical; per-block
    budget ~ limit / 4.5 (in + out double-buffered + scratch + headroom)."""
    phys = None
    try:
        phys = getattr(pltpu.get_tpu_info(), "vmem_capacity_bytes", None)
    except Exception:
        phys = None
    if not phys:
        phys = 64 * 1024 * 1024  # conservative fallback = v7x per-TC VMEM
    vmem_limit = int(phys * 0.70)
    block_budget = int(vmem_limit / 4.5)
    return vmem_limit, block_budget


def _pick_block_batch(batch, channels, hw, itemsize, block_budget):
    """Pick the batch-block size Bt. Returns None if even Bt=1 doesn't fit
    (caller uses the two-pass fallback)."""
    per_batch = channels * hw * itemsize
    if per_batch > block_budget:
        return None
    max_bt = max(1, block_budget // per_batch)
    divisors = [d for d in range(1, batch + 1) if batch % d == 0 and d <= max_bt]
    total_bytes = batch * per_batch
    if total_bytes <= _TINY_PROBLEM_BYTES:
        # Tiny problem: a single (or minimal) grid step; splitting only adds
        # ~0.35us/step overhead on single-TC chips (v5e/v6e).
        return max(divisors)
    # Large problem: prefer >= 4 steps (2 per v7x TensorCore => per-core
    # double buffering), else >= 2, else the biggest block that fits.
    for min_steps in (4, 2):
        cand = [d for d in divisors if batch // d >= min_steps]
        if cand:
            return max(cand)
    return max(divisors)


def _pick_hw_tile(hwp, channels, itemsize, block_budget):
    """Spatial tile (multiple of 128, divides hwp) for the two-pass fallback."""
    n128 = hwp // 128
    per_lane_block = max(1, channels * 128 * itemsize)
    max_g = max(1, block_budget // per_lane_block)
    g = max([d for d in range(1, n128 + 1) if n128 % d == 0 and d <= max_g] or [1])
    return g * 128


# ------------------------------ single-pass ------------------------------ #

def _eca_kernel(x_ref, w_ref, o_ref, ppad_ref, *, k, pad, channels, inv_hw):
    # x_ref   : (Bt, C, HWp) input block (input dtype)
    # w_ref   : (k,) conv taps in SMEM (f32)
    # o_ref   : (Bt, C, HWp) output block
    # ppad_ref: (Bt, C + 2*pad) f32 VMEM scratch (zero-padded pooled row)

    # Global average pool over HW with a widening f32 reduce (padded lanes are
    # zero and inv_hw uses the true HW, so the mean is exact).
    pooled = jnp.sum(x_ref[...], axis=-1, dtype=jnp.float32) * inv_hw  # (Bt, C)
    bt = pooled.shape[0]

    # Zero only the 2*pad halo lanes, then write the pooled row; the k-tap
    # zero-padded Conv1d becomes k shifted multiply-adds on the scratch.
    if pad > 0:
        halo = jnp.zeros((bt, pad), jnp.float32)
        ppad_ref[:, pl.ds(0, pad)] = halo
        ppad_ref[:, pl.ds(pad + channels, pad)] = halo
    ppad_ref[:, pl.ds(pad, channels)] = pooled

    y = w_ref[0] * ppad_ref[:, pl.ds(0, channels)]
    for j in range(1, k):
        y = y + w_ref[j] * ppad_ref[:, pl.ds(j, channels)]

    gate = jax.nn.sigmoid(y)  # (Bt, C), f32

    # Gating writeback re-reads x from VMEM (no full-block value kept live).
    # Note: for bf16/fp8 inputs this rounds the gate before the multiply
    # (one extra rounding vs. a pure-f32 reference).
    o_ref[...] = x_ref[...] * gate.astype(o_ref.dtype)[..., None]


def _eca_single_pass(x_flat, w32, C, HW, HWp, pad, k, bt, vmem_limit):
    B = x_flat.shape[0]
    grid = (B // bt,)
    kernel = functools.partial(
        _eca_kernel, k=k, pad=pad, channels=C, inv_hw=1.0 / float(HW))

    itemsize = x_flat.dtype.itemsize
    cost = pl.CostEstimate(
        flops=3 * B * C * HWp + 2 * k * B * C,
        transcendentals=B * C,
        bytes_accessed=2 * B * C * HWp * itemsize + k * 4,
    )

    # TODO(synk): if profiling shows inter-step DMA gaps on small blocks, add
    # pipeline_mode=pl.Buffered(3) on the x input spec where VMEM headroom allows.
    return pl.pallas_call(
        kernel,
        out_shape=jax.ShapeDtypeStruct((B, C, HWp), x_flat.dtype),
        grid=grid,
        in_specs=[
            pl.BlockSpec((bt, C, HWp), lambda b: (b, 0, 0)),
            pl.BlockSpec(memory_space=pltpu.MemorySpace.SMEM),
        ],
        out_specs=pl.BlockSpec((bt, C, HWp), lambda b: (b, 0, 0)),
        scratch_shapes=[pltpu.VMEM((bt, C + 2 * pad), jnp.float32)],
        compiler_params=pltpu.CompilerParams(
            dimension_semantics=("parallel",),
            vmem_limit_bytes=vmem_limit,
        ),
        cost_estimate=cost,
    )(x_flat, w32)


# --------------------------- two-pass fallback ---------------------------- #

def _pool_kernel(x_ref, o_ref, acc_ref, *, inv_hw):
    s = pl.program_id(1)

    @pl.when(s == 0)
    def _init():
        acc_ref[...] = jnp.zeros_like(acc_ref)

    acc_ref[...] += jnp.sum(x_ref[...], axis=-1, dtype=jnp.float32)

    @pl.when(s == pl.num_programs(1) - 1)
    def _fin():
        o_ref[...] = acc_ref[...] * inv_hw


def _scale_kernel(x_ref, g_ref, o_ref):
    o_ref[...] = x_ref[...] * g_ref[...].astype(o_ref.dtype)[..., None]


def _eca_two_pass(x_flat, w32, C, HW, HWp, pad, k, block_budget, vmem_limit):
    """For very large C*HW rows (v7x VMEM): pool (spatially tiled), gate on the
    tiny (B, C) row in plain JAX, then scale (spatially tiled)."""
    B = x_flat.shape[0]
    hw_t = _pick_hw_tile(HWp, C, x_flat.dtype.itemsize, block_budget)
    n_s = HWp // hw_t

    pooled = pl.pallas_call(
        functools.partial(_pool_kernel, inv_hw=1.0 / float(HW)),
        out_shape=jax.ShapeDtypeStruct((B, C), jnp.float32),
        grid=(B, n_s),
        in_specs=[pl.BlockSpec((1, C, hw_t), lambda b, s: (b, 0, s))],
        out_specs=pl.BlockSpec((1, C), lambda b, s: (b, 0)),
        scratch_shapes=[pltpu.VMEM((1, C), jnp.float32)],
        compiler_params=pltpu.CompilerParams(
            dimension_semantics=("parallel", "arbitrary"),
            vmem_limit_bytes=vmem_limit,
        ),
    )(x_flat)

    # Tiny (B, C) channel conv + sigmoid outside the kernel.
    pooled_pad = jnp.pad(pooled, ((0, 0), (pad, pad)))
    y = jnp.zeros((B, C), jnp.float32)
    for j in range(k):
        y = y + w32[j] * pooled_pad[:, j:j + C]
    gate = jax.nn.sigmoid(y)

    return pl.pallas_call(
        _scale_kernel,
        out_shape=jax.ShapeDtypeStruct((B, C, HWp), x_flat.dtype),
        grid=(B, n_s),
        in_specs=[pl.BlockSpec((1, C, hw_t), lambda b, s: (b, 0, s)),
                  pl.BlockSpec((1, C), lambda b, s: (b, 0))],
        out_specs=pl.BlockSpec((1, C, hw_t), lambda b, s: (b, 0, s)),
        compiler_params=pltpu.CompilerParams(
            dimension_semantics=("parallel", "parallel"),
            vmem_limit_bytes=vmem_limit,
        ),
    )(x_flat, gate)


# --------------------------------- wrapper -------------------------------- #

def eca_block_pallas(x: jnp.ndarray, conv_weights: jnp.ndarray) -> jnp.ndarray:
    """x: (B, C, H, W) NCHW; conv_weights: (k,) Conv1d taps (no bias)."""
    B, C, H, W = x.shape
    HW = H * W
    k = int(conv_weights.shape[0])
    pad = (k - 1) // 2
    w32 = conv_weights.astype(jnp.float32)

    # Lane-dense last dim: pad HW up to a multiple of 128 when needed.  The
    # padded lanes are zero (no effect on the pooled mean) and are sliced off.
    HWp = -(-HW // 128) * 128
    x_flat = x.reshape(B, C, HW)
    if HWp != HW:
        # TODO(synk): the wrapper-side pad costs one extra HBM copy; a fused
        # in-kernel masked tail store would avoid it for odd feature maps.
        x_flat = jnp.pad(x_flat, ((0, 0), (0, 0), (0, HWp - HW)))

    vmem_limit, block_budget = _vmem_limits()
    bt = _pick_block_batch(B, C, HWp, x.dtype.itemsize, block_budget)

    if bt is None:
        out_flat = _eca_two_pass(x_flat, w32, C, HW, HWp, pad, k,
                                 block_budget, vmem_limit)
    else:
        out_flat = _eca_single_pass(x_flat, w32, C, HW, HWp, pad, k, bt,
                                    vmem_limit)

    if HWp != HW:
        out_flat = out_flat[:, :, :HW]
    return out_flat.reshape(B, C, H, W)


def _eca_reference(x: jnp.ndarray, conv_weights: jnp.ndarray) -> jnp.ndarray:
    """Pure-JAX reference mirroring the PyTorch forward."""
    B, C, H, W = x.shape
    k = conv_weights.shape[0]
    pad = (k - 1) // 2
    pooled = jnp.mean(x.astype(jnp.float32), axis=(2, 3))    # (B, C)
    pooled_pad = jnp.pad(pooled, ((0, 0), (pad, pad)))
    y = jnp.zeros((B, C), jnp.float32)
    for j in range(k):
        y = y + conv_weights[j] * pooled_pad[:, j:j + C]
    gate = jax.nn.sigmoid(y)[:, :, None, None]
    return (x.astype(jnp.float32) * gate).astype(x.dtype)


if __name__ == "__main__":
    # channel=16 -> kernel_size=3 (same formula as the module); HW=256 is a
    # multiple of 128 so load/store blocks are lane-dense.
    B, C, H, W = 4, 16, 16, 16
    k = _eca_kernel_size(C)

    key = jax.random.PRNGKey(0)
    kx, kw = jax.random.split(key)
    x = jax.random.normal(kx, (B, C, H, W), dtype=jnp.float32)
    # Deterministic synthetic Conv1d(1, 1, k, bias=False) weights.
    conv_w = (jax.random.normal(kw, (k,), dtype=jnp.float32)
              / jnp.sqrt(jnp.float32(k)))

    out = eca_block_pallas(x, conv_w)
    out = jax.block_until_ready(out)

    ref = _eca_reference(x, conv_w)
    assert out.shape == (B, C, H, W)
    assert jnp.allclose(out, ref, atol=1e-5, rtol=1e-5)

    print("KERNEL_OK")
</pallas_src>

<mosaic_0001>
module attributes {stable_mosaic.version = 11 : i64} {
  func.func @_eca_kernel(%arg0: i32, %arg1: memref<4x16x256xf32, #tpu.memory_space<vmem>>, %arg2: memref<3xf32, #tpu.memory_space<smem>>, %arg3: memref<4x16x256xf32, #tpu.memory_space<vmem>>, %arg4: memref<4x18xf32, #tpu.memory_space<vmem>>) attributes {dimension_semantics = [#tpu.dimension_semantics<parallel>], iteration_bounds = array<i64: 1>, scalar_prefetch = 0 : i64, scratch_operands = 1 : i64, tpu.core_type = #tpu.core_type<tc>, window_params = [{transform_indices = @transform_0, window_bounds = array<i64: 4, 16, 256>}, {transform_indices = @transform_1, window_bounds = array<i64: 3>}, {transform_indices = @transform_2, window_bounds = array<i64: 4, 16, 256>}]} {
    %c0 = arith.constant 0 : index
    %c0_0 = arith.constant 0 : index
    %c0_1 = arith.constant 0 : index
    %0 = vector.load %arg1[%c0, %c0_0, %c0_1] : memref<4x16x256xf32, #tpu.memory_space<vmem>>, vector<4x16x256xf32>
    %cst = arith.constant dense<0.000000e+00> : vector<4x16xf32>
    %1 = vector.multi_reduction <add>, %0, %cst [2] : vector<4x16x256xf32> to vector<4x16xf32>
    %cst_2 = arith.constant 3.906250e-03 : f32
    %2 = vector.broadcast %cst_2 : f32 to vector<4x16xf32>
    %3 = arith.mulf %1, %2 : vector<4x16xf32>
    %cst_3 = arith.constant 0.000000e+00 : f32
    %4 = vector.broadcast %cst_3 : f32 to vector<4x1xf32>
    %c0_4 = arith.constant 0 : index
    %c0_5 = arith.constant 0 : index
    %5 = vector.load %arg4[%c0_4, %c0_5] : memref<4x18xf32, #tpu.memory_space<vmem>>, vector<4x1xf32>
    tpu.vector_store %arg4[%c0_4, %c0_5], %4 {strides = array<i32>} : memref<4x18xf32, #tpu.memory_space<vmem>>, vector<4x1xf32>,
    %c0_6 = arith.constant 0 : index
    %c17 = arith.constant 17 : index
    %6 = vector.load %arg4[%c0_6, %c17] : memref<4x18xf32, #tpu.memory_space<vmem>>, vector<4x1xf32>
    tpu.vector_store %arg4[%c0_6, %c17], %4 {strides = array<i32>} : memref<4x18xf32, #tpu.memory_space<vmem>>, vector<4x1xf32>,
    %c0_7 = arith.constant 0 : index
    %c1 = arith.constant 1 : index
    %7 = vector.load %arg4[%c0_7, %c1] : memref<4x18xf32, #tpu.memory_space<vmem>>, vector<4x16xf32>
    tpu.vector_store %arg4[%c0_7, %c1], %3 {strides = array<i32>} : memref<4x18xf32, #tpu.memory_space<vmem>>, vector<4x16xf32>,
    %c0_8 = arith.constant 0 : index
    %8 = memref.load %arg2[%c0_8] : memref<3xf32, #tpu.memory_space<smem>>
    %c0_9 = arith.constant 0 : index
    %c0_10 = arith.constant 0 : index
    %9 = vector.load %arg4[%c0_9, %c0_10] : memref<4x18xf32, #tpu.memory_space<vmem>>, vector<4x16xf32>
    %10 = vector.broadcast %8 : f32 to vector<4x16xf32>
    %11 = arith.mulf %10, %9 : vector<4x16xf32>
    %c1_11 = arith.constant 1 : index
    %12 = memref.load %arg2[%c1_11] : memref<3xf32, #tpu.memory_space<smem>>
    %c0_12 = arith.constant 0 : index
    %c1_13 = arith.constant 1 : index
    %13 = vector.load %arg4[%c0_12, %c1_13] : memref<4x18xf32, #tpu.memory_space<vmem>>, vector<4x16xf32>
    %14 = vector.broadcast %12 : f32 to vector<4x16xf32>
    %15 = arith.mulf %14, %13 : vector<4x16xf32>
    %16 = arith.addf %11, %15 : vector<4x16xf32>
    %c2 = arith.constant 2 : index
    %17 = memref.load %arg2[%c2] : memref<3xf32, #tpu.memory_space<smem>>
    %c0_14 = arith.constant 0 : index
    %c2_15 = arith.constant 2 : index
    %18 = vector.load %arg4[%c0_14, %c2_15] : memref<4x18xf32, #tpu.memory_space<vmem>>, vector<4x16xf32>
    %19 = vector.broadcast %17 : f32 to vector<4x16xf32>
    %20 = arith.mulf %19, %18 : vector<4x16xf32>
    %21 = arith.addf %16, %20 : vector<4x16xf32>
    %22 = arith.negf %21 : vector<4x16xf32>
    %23 = math.exp %22 : vector<4x16xf32>
    %cst_16 = arith.constant 1.000000e+00 : f32
    %24 = vector.broadcast %cst_16 : f32 to vector<4x16xf32>
    %25 = arith.addf %24, %23 : vector<4x16xf32>
    %26 = arith.divf %24, %25 : vector<4x16xf32>
    %c0_17 = arith.constant 0 : index
    %c0_18 = arith.constant 0 : index
    %c0_19 = arith.constant 0 : index
    %27 = vector.load %arg1[%c0_17, %c0_18, %c0_19] : memref<4x16x256xf32, #tpu.memory_space<vmem>>, vector<4x16x256xf32>
    %28 = vector.shape_cast %26 : vector<4x16xf32> to vector<4x16x1xf32>
    %29 = vector.broadcast %28 : vector<4x16x1xf32> to vector<4x16x256xf32>
    %30 = arith.mulf %27, %29 : vector<4x16x256xf32>
    %c0_20 = arith.constant 0 : index
    %c0_21 = arith.constant 0 : index
    %c0_22 = arith.constant 0 : index
    %31 = vector.load %arg3[%c0_20, %c0_21, %c0_22] : memref<4x16x256xf32, #tpu.memory_space<vmem>>, vector<4x16x256xf32>
    tpu.vector_store %arg3[%c0_20, %c0_21, %c0_22], %30 {strides = array<i32>} : memref<4x16x256xf32, #tpu.memory_space<vmem>>, vector<4x16x256xf32>,
    return
  }
  func.func @transform_0(%arg0: i32) -> (i32, i32, i32) {
    %c0_i32 = arith.constant 0 : i32
    %c0_i32_0 = arith.constant 0 : i32
    %c0_i32_1 = arith.constant 0 : i32
    return %arg0, %c0_i32, %c0_i32_0 : i32, i32, i32
  }
  func.func @transform_1(%arg0: i32) -> i32 {
    %c0_i32 = arith.constant 0 : i32
    %c0_i32_0 = arith.constant 0 : i32
    return %c0_i32 : i32
  }
  func.func @transform_2(%arg0: i32) -> (i32, i32, i32) {
    %c0_i32 = arith.constant 0 : i32
    %c0_i32_0 = arith.constant 0 : i32
    %c0_i32_1 = arith.constant 0 : i32
    return %arg0, %c0_i32, %c0_i32_0 : i32, i32, i32
  }
}

</mosaic_0001>

<bundles_post_ra>
// kernel: tpu_custom_call.1
= control target key start
LH: loop header
LB: loop body
LE: loop exit
PB: predicated region body
PF: predicated region fallthrough
CT: control target
= control target key end

     0   :  { %7 = vsyncpa [#allocation4], 0  ;;  %s494_s0 = inlined_call_operand.hbm [shape: f32[4,16,256], index: 0, kind: input, shape index: {}]   ;;  %s495_s1 = inlined_call_operand.vmem [shape: f32[3], index: 1, kind: input, shape index: {}]   ;;  %s496_s2 = inlined_call_operand.hbm [shape: f32[4,16,256], index: 2, kind: output, shape index: {}]  }
   0x1   :  { %8 = vsyncpa [#allocation6], 0 }
   0x2   :  { %9 = vsyncpa [#allocation5], 0  ;;  %s362_s9 = smov [#allocation3]   ;;  %s28_s13 = sshll.u32 %s495_s1, 4  ;;  %s29_s13 = int_to_ptr.vmem [resolvable:$true] %s28_s13 }
   0x3   :  { %s15_s10 = sshll.u32 %s362_s9, 4  ;;  %s300_s16 = scalar_lea.hbm %s494_s0, 2048  ;;  %s16_s10 = int_to_ptr.vmem [resolvable:$true] %s15_s10 }
   0x4   :  { %p301_p0 = scmp.ne.s32.totalorder %s494_s0, %s300_s16  ;;  %p304_p1 = scmp.lt.u32.totalorder %s300_s16, %s494_s0 }
   0x6   :  { %p306_p2 = pnand %p304_p1, %p301_p0 }
   0x8   :  { %309 = shalt.err (!%p306_p2)
}
   0x9   :  { %s310_s21 = scalar_lea.vmem %s16_s10, 2048  ;;  %p315_p4 = scmp.lt.s32.totalorder %s16_s10, %s16_s10 }
   0xa   :  { %p311_p3 = scmp.ne.s32.totalorder %s16_s10, %s310_s21  ;;  %p316_p5 = scmp.lt.s32.totalorder %s310_s21, %s310_s21 }
   0xc   :  { %p317_p6 = por %p316_p5, %p315_p4 }
   0xe   :  { %p318_p7 = pnand %p317_p6, %p311_p3 }
  0x10   :  { %321 = shalt.err (!%p318_p7)
}
  0x11   :  { %s363_s1 = smov 256   ;;  %s364_s22 = smov 16  }
  0x12   :  { %21 = dma.hbm_to_vmem [thread:$0]  %s494_s0, 2048, %s16_s10, [#allocation4], %s363_s1, %s363_s1, %s364_s22  }
  0x13   :  { %s322_s25 = scalar_lea.vmem %s29_s13, 16  ;;  %p327_p9 = scmp.lt.s32.totalorder %s29_s13, %s29_s13 }
  0x14   :  { %p323_p8 = scmp.ne.s32.totalorder %s29_s13, %s322_s25  ;;  %p328_p10 = scmp.lt.s32.totalorder %s322_s25, %s322_s25 }
  0x16   :  { %p329_p11 = por %p328_p10, %p327_p9 }
  0x18   :  { %p330_p12 = pnand %p329_p11, %p323_p8 }
  0x1a   :  { %333 = shalt.err (!%p330_p12)
}
  0x1b   :  { %s365_s26 = smov [#allocation7]  }
  0x1c   :  { %31 = dma.vmem_to_smem %s29_s13, 16, %s365_s26, [#allocation6]  }
  0x1d   :  { %356 = dma.done.wait [#allocation4], 2048  }
  0x1e   :  { %357 = vsyncadd [#allocation4], 4294965248 }
  0x1f   :  { %358 = dma.done.wait [#allocation6], 16  }
  0x20   :  { %359 = vsyncadd [#allocation6], 4294967280 }
  0x21   :  { %38 = sfence }
  0x22   :  { %v403_v0 = vld [vmem:[#allocation3 + $0x20] sm:$0xff]  ;;  %v405_v1 = vld [vmem:[#allocation3 + $0x28] sm:$0xff]  ;;  %v413_v5 = vld [vmem:[#allocation3 + $0x30] sm:$0xff]  ;;  %vm87_vm0 = vcmask 3072   ;;  %vm89_vm1 = vcmask 142472   ;;  %v366_v24 = vmov 0.0   ;;  %v99_v25 = vlaneseq }
  0x23   :  { %v407_v2 = vld [vmem:[#allocation3] sm:$0xff]  ;;  %v61_v3 = vadd.f32 %v405_v1, %v403_v0  ;;  %v411_v4 = vld [vmem:[#allocation3 + $0x8] sm:$0xff]  ;;  %v415_v6 = vld [vmem:[#allocation3 + $0x38] sm:$0xff]  ;;  %88 = vst.msk [vmem:[#allocation2] sm:$0xf] %vm87_vm0, %v366_v24  ;;  %vm111_vm2 = vcmask 138312  }
  0x24   :  { %v55_v7 = vadd.f32 %v411_v4, %v407_v2  ;;  %v419_v8 = vld [vmem:[#allocation3 + $0x10] sm:$0xff]  ;;  %v421_v9 = vld [vmem:[#allocation3 + $0x18] sm:$0xff]  ;;  %v64_v10 = vadd.f32 %v415_v6, %v413_v5  ;;  %v431_v14 = vld [vmem:[#allocation3 + $0x40] sm:$0xff]  ;;  %90 = vst.msk [vmem:[#allocation2] sm:$0xf] %vm89_vm1, %v366_v24  ;;  %v100_v26 = vand.u32 127, %v99_v25 }
  0x25   :  { %62 = vadd.xlane.f32.xlu1 %v61_v3  ;;  %v58_v11 = vadd.f32 %v421_v9, %v419_v8  ;;  %v427_v12 = vld [vmem:[#allocation3 + $0x50] sm:$0xff]  ;;  %v429_v13 = vld [vmem:[#allocation3 + $0x58] sm:$0xff]  ;;  %v433_v15 = vld [vmem:[#allocation3 + $0x48] sm:$0xff]  ;;  %v451_v31 = vshrl.u32 %v99_v25, 7  ;;  %vm140_vm3 = vcmask 1041409   ;;  %vm142_vm4 = vcmask 1042434  }
  0x26   :  { %56 = vadd.xlane.f32.xlu0 %v55_v7  ;;  %v70_v16 = vadd.f32 %v429_v13, %v427_v12  ;;  %v67_v17 = vadd.f32 %v433_v15, %v431_v14  ;;  %v439_v18 = vld [vmem:[#allocation3 + $0x70] sm:$0xff]  ;;  %v441_v19 = vld [vmem:[#allocation3 + $0x78] sm:$0xff]  ;;  %v443_v20 = vld [vmem:[#allocation3 + $0x60] sm:$0xff]  ;;  %v106_v29 = vadd.s32 4294967287, %v100_v26  ;;  %v101_v30 = vadd.s32 4294967295, %v100_v26  ;;  %s286_s0 = sld [smem:[#allocation7 + $0x2]] }
  0x27   :  { %v445_v21 = vld [vmem:[#allocation3 + $0x68] sm:$0xff]  ;;  %v76_v22 = vadd.f32 %v441_v19, %v439_v18  ;;  %vm144_vm5 = vcmask 1043459   ;;  %vm147_vm6 = vcmask 134152   ;;  %s285_s27 = sld [smem:[#allocation7 + $0x1]]  ;;  %s367_s28 = smov 126  }
  0x28   :  { %v73_v23 = vadd.f32 %v445_v21, %v443_v20  ;;  %v109_v34 = vsub.s32 %v106_v29, %v451_v31  ;;  %v104_v37 = vsub.s32 %v101_v30, %v451_v31  ;;  %s368_s29 = smov 127   ;;  %s149_s30 = sld [smem:[#allocation7]]  ;;  %v204_v29 = vsub.s32 1, %v451_v31 }
  0x29   :  { %65 = vadd.xlane.f32.xlu1 %v64_v10  ;;  %v193_v30 = vsub.s32 0, %v451_v31  ;;  %s369_s3 = smov [#allocation8]  }
  0x2a   :  { %59 = vadd.xlane.f32.xlu0 %v58_v11  ;;  %s272_s4 = sshll.u32 %s369_s3, 4  ;;  %s273_s4 = int_to_ptr.vmem [resolvable:$true] %s272_s4 }
  0x2b   :  { %s334_s5 = scalar_lea.vmem %s273_s4, 2048  ;;  %p339_p0 = scmp.lt.s32.totalorder %s273_s4, %s273_s4 }
  0x2c   :  { %v162_v63 = vstv %s286_s0  ;;  %p335_p13 = scmp.ne.s32.totalorder %s273_s4, %s334_s5  ;;  %p340_p1 = scmp.lt.s32.totalorder %s334_s5, %s334_s5 }
  0x2d   :  { %71 = vadd.xlane.f32.xlu1 %v70_v16  ;;  %v154_v3 = vstv %s285_s27 }
  0x2e   :  { %68 = vadd.xlane.f32.xlu0 %v67_v17  ;;  %v151_v16 = vstv %s149_s30  ;;  %p341_p2 = por %p340_p1, %p339_p0 }
  0x30   :  { %p342_p3 = pnand %p341_p2, %p335_p13 }
  0x31   :  { %77 = vadd.xlane.f32.xlu1 %v76_v22 }
  0x32   :  { %74 = vadd.xlane.f32.xlu0 %v73_v23 }
  0xb2   :  { %v63_v27 = vpop.xlane.xlu1 %62 }
  0xb3   :  { %v57_v28 = vpop.xlane.xlu0 %56  ;;  %v81_v38 = vmul.f32 0.00390625, %v63_v27 }
  0xb4   :  { %v79_v39 = vmul.f32 0.00390625, %v57_v28 }
  0xb5   :  { %v116_v47 = vrot.slane %v81_v38, %v104_v37 }
  0xb6   :  { %v66_v32 = vpop.xlane.xlu1 %65  ;;  %v105_v48 = vrot.slane %v79_v39, %v104_v37 }
  0xb7   :  { %v60_v33 = vpop.xlane.xlu0 %59  ;;  %v82_v35 = vmul.f32 0.00390625, %v66_v32 }
  0xb8   :  { %v80_v36 = vmul.f32 0.00390625, %v60_v33 }
  0xb9   :  { %v120_v43 = vrot.slane %v82_v35, %v109_v34  ;;  %v215_v35 = vsub.s32 2, %v451_v31 }
  0xba   :  { %v72_v40 = vpop.xlane.xlu1 %71  ;;  %v110_v44 = vrot.slane %v80_v36, %v109_v34 }
  0xbb   :  { %v84_v41 = vmul.f32 0.00390625, %v72_v40  ;;  %v69_v42 = vpop.xlane.xlu0 %68  ;;  %v121_v53 = vsel %vm111_vm2, %v120_v43, %v116_v47 }
  0xbc   :  { %v83_v45 = vmul.f32 0.00390625, %v69_v42  ;;  %v112_v54 = vsel %vm111_vm2, %v110_v44, %v105_v48 }
  0xbd   :  { %v129_v46 = vrot.slane %v84_v41, %v109_v34  ;;  %v141_v59 = vsel %vm140_vm3, %v121_v53, %v112_v54 }
  0xbe   :  { %v125_v49 = vrot.slane %v83_v45, %v104_v37  ;;  %v78_v50 = vpop.xlane.xlu1 %77 }
  0xbf   :  { %v86_v51 = vmul.f32 0.00390625, %v78_v50  ;;  %v75_v52 = vpop.xlane.xlu0 %74 }
  0xc0   :  { %v85_v55 = vmul.f32 0.00390625, %v75_v52  ;;  %v130_v56 = vsel %vm111_vm2, %v129_v46, %v125_v49 }
  0xc1   :  { %v138_v57 = vrot.slane %v86_v51, %v109_v34  ;;  %v143_v60 = vsel %vm142_vm4, %v130_v56, %v141_v59 }
  0xc2   :  { %v134_v58 = vrot.slane %v85_v55, %v104_v37  ;;  %v226_v37 = vsub.s32 3, %v451_v31 }
  0xc4   :  { %v139_v61 = vsel %vm111_vm2, %v138_v57, %v134_v58 }
  0xc5   :  { %v145_v62 = vsel %vm144_vm5, %v139_v61, %v143_v60 }
  0xc6   :  { %148 = vst.msk [vmem:[#allocation2] sm:$0xf] %vm147_vm6, %v145_v62 }
  0xcd   :  { %v150_v7 = vld [vmem:[#allocation2] sm:$0xf] }
  0xce   :  { %v163_v10 = vmul.f32 %v162_v63, %v150_v7  ;;  %v155_v11 = vmul.f32 %v154_v3, %v150_v7  ;;  %v152_v17 = vmul.f32 %v151_v16, %v150_v7 }
  0xd0   :  { %165 = vrot.lane.b32.xlu1 %v163_v10, %s367_s28  ;;  %157 = vrot.lane.b32.xlu0 %v155_v11, %s368_s29 }
 0x142   :  { %v158_v22 = vpop.permute.xlu0 %157  ;;  %v166_v24 = vpop.permute.xlu1 %165 }
 0x143   :  { %v160_v23 = vadd.f32 %v158_v22, %v152_v17 }
 0x145   :  { %v168_v25 = vadd.f32 %v166_v24, %v160_v23 }
 0x147   :  { %v287_v26 = vmul.f32 -1.442695, %v168_v25 }
 0x149   :  { %296 = vpow2.f32 %v287_v26 }
 0x153   :  { %v297_v27 = vpop.eup %296 }
 0x154   :  { %v172_v28 = vadd.f32 1.0, %v297_v27 }
 0x156   :  { %298 = vrcp.f32 %v172_v28 }
 0x160   :  { %v299_v32 = vpop.eup %298 }
 0x161   :  { %v205_v33 = vrot.slane %v299_v32, %v204_v29  ;;  %v194_v34 = vrot.slane %v299_v32, %v193_v30  ;;  %v216_v36 = vrot.slane %v299_v32, %v215_v35  ;;  %v227_v38 = vrot.slane %v299_v32, %v226_v37 }
 0x163   :  { %207 = vbcast.lane.b32.xlu0 %v205_v33, 256  ;;  %196 = vbcast.lane.b32.xlu1 %v194_v34, 256 }
 0x167   :  { %218 = vbcast.lane.b32.xlu0 %v216_v36, 256  ;;  %200 = vbcast.lane.b32.xlu1 %v194_v34, 264 }
 0x16b   :  { %229 = vbcast.lane.b32.xlu0 %v227_v38, 256  ;;  %211 = vbcast.lane.b32.xlu1 %v205_v33, 264 }
 0x16f   :  { %222 = vbcast.lane.b32.xlu1 %v216_v36, 264 }
 0x173   :  { %233 = vbcast.lane.b32.xlu1 %v227_v38, 264 }
 0x1d5   :  { %v208_v39 = vpop.permute.xlu0 %207  ;;  %v197_v40 = vpop.permute.xlu1 %196 }
 0x1d6   :  { %v239_v41 = vmul.f32 %v208_v39, %v403_v0  ;;  %v240_v42 = vmul.f32 %v208_v39, %v405_v1  ;;  %v235_v43 = vmul.f32 %v197_v40, %v407_v2  ;;  %v236_v44 = vmul.f32 %v197_v40, %v411_v4 }
 0x1d8   :  { %255 = vst [vmem:[#allocation8 + $0x20] sm:$0xff] %v239_v41  ;;  %256 = vst [vmem:[#allocation8 + $0x28] sm:$0xff] %v240_v42 }
 0x1d9   :  { %251 = vst [vmem:[#allocation8] sm:$0xff] %v235_v43  ;;  %252 = vst [vmem:[#allocation8 + $0x8] sm:$0xff] %v236_v44  ;;  %v219_v31 = vpop.permute.xlu0 %218  ;;  %v201_v45 = vpop.permute.xlu1 %200 }
 0x1da   :  { %v243_v46 = vmul.f32 %v219_v31, %v431_v14  ;;  %v244_v47 = vmul.f32 %v219_v31, %v433_v15  ;;  %v237_v48 = vmul.f32 %v201_v45, %v419_v8  ;;  %v238_v0 = vmul.f32 %v201_v45, %v421_v9 }
 0x1dc   :  { %259 = vst [vmem:[#allocation8 + $0x40] sm:$0xff] %v243_v46  ;;  %260 = vst [vmem:[#allocation8 + $0x48] sm:$0xff] %v244_v47 }
 0x1dd   :  { %253 = vst [vmem:[#allocation8 + $0x10] sm:$0xff] %v237_v48  ;;  %254 = vst [vmem:[#allocation8 + $0x18] sm:$0xff] %v238_v0  ;;  %v230_v1 = vpop.permute.xlu0 %229  ;;  %v212_v2 = vpop.permute.xlu1 %211 }
 0x1de   :  { %v247_v4 = vmul.f32 %v230_v1, %v443_v20  ;;  %v248_v49 = vmul.f32 %v230_v1, %v445_v21  ;;  %v241_v50 = vmul.f32 %v212_v2, %v413_v5  ;;  %v242_v14 = vmul.f32 %v212_v2, %v415_v6 }
 0x1e0   :  { %263 = vst [vmem:[#allocation8 + $0x60] sm:$0xff] %v247_v4  ;;  %264 = vst [vmem:[#allocation8 + $0x68] sm:$0xff] %v248_v49 }
 0x1e1   :  { %257 = vst [vmem:[#allocation8 + $0x30] sm:$0xff] %v241_v50  ;;  %258 = vst [vmem:[#allocation8 + $0x38] sm:$0xff] %v242_v14  ;;  %v223_v8 = vpop.permute.xlu1 %222 }
 0x1e2   :  { %v245_v9 = vmul.f32 %v223_v8, %v427_v12  ;;  %v246_v15 = vmul.f32 %v223_v8, %v429_v13 }
 0x1e4   :  { %261 = vst [vmem:[#allocation8 + $0x50] sm:$0xff] %v245_v9  ;;  %262 = vst [vmem:[#allocation8 + $0x58] sm:$0xff] %v246_v15 }
 0x1e5   :  { %v234_v20 = vpop.permute.xlu1 %233 }
 0x1e6   :  { %v249_v21 = vmul.f32 %v234_v20, %v439_v18  ;;  %v250_v5 = vmul.f32 %v234_v20, %v441_v19 }
 0x1e8   :  { %265 = vst [vmem:[#allocation8 + $0x70] sm:$0xff] %v249_v21  ;;  %266 = vst [vmem:[#allocation8 + $0x78] sm:$0xff] %v250_v5 }
 0x1e9   :  { %345 = shalt.err (!%p342_p3)
}
 0x1ea   :  { %s346_s8 = scalar_lea.hbm %s496_s2, 2048 }
 0x1eb   :  { %p347_p4 = scmp.ne.s32.totalorder %s496_s2, %s346_s8  ;;  %p350_p5 = scmp.lt.u32.totalorder %s346_s8, %s496_s2 }
 0x1ed   :  { %p352_p6 = pnand %p350_p5, %p347_p4 }
 0x1ef   :  { %355 = shalt.err (!%p352_p6)
}
 0x1f0   :  { %278 = dma.vmem_to_hbm [thread:$0]  %s273_s4, 2048, %s496_s2, [#allocation5], %s363_s1, %s363_s1, %s364_s22  }
 0x1f1   :  { %360 = dma.done.wait [#allocation5], 2048  }
 0x1f2   :  { %361 = vsyncadd [#allocation5], 4294965248 }
 0x1f3   :  { %282 = vsyncpa [#allocation4], 1 }
 0x1f4   :  { %283 = vsyncpa [#allocation5], 1 }
 0x1f5   :  { %284 = vsyncpa [#allocation6], 1 }

</bundles_post_ra>
